<compile_context>
chip_gen: v7x
topology: tpu7x:2x2x1
jax: 0.10.0
libtpu: 0.0.40
codegen_flags: <defaults>
</compile_context>

<pallas_src>
import numpy as np
import jax
import jax.numpy as jnp
from jax import lax
from jax.experimental import pallas as pl
from jax.experimental.pallas import tpu as pltpu


_EPS = 1e-12
_NUM_CLASSES = 3          # the module only uses class channels 0..2
_MAX_TILE_ROWS = 8192     # (8192, 128) f32 block = 4 MiB; x2 inputs x2 buffers = 16 MiB


def _sublane_multiple(dtype):
    """Packed-sublane requirement: 8 for f32, 16 for bf16, 32 for int8/bool."""
    return max(8, 32 // jnp.dtype(dtype).itemsize)


def _make_gdl_kernel(tile_rows, total_rows, n_chunks, tiles_per_chunk, needs_mask):
    """Builds the per-(class, batch*chunk, row-tile) accumulation kernel."""
    last_tile = n_chunks * tiles_per_chunk - 1

    def kernel(real_ref, pred_ref, out_ref):
        # real_ref / pred_ref : (1, tile_rows, 128) native dtype
        # out_ref             : (1, 1, 3, 8, 128) f32 per-(class, p) accumulator
        p_idx = pl.program_id(1)
        t = pl.program_id(2)

        # Zero this (class, p) accumulator at its first row-tile.
        @pl.when(t == 0)
        def _():
            out_ref[...] = jnp.zeros_like(out_ref)

        # Upcast right after the load; accumulate in f32 (v5e has no bf16 VPU).
        r = real_ref[0].astype(jnp.float32)    # (tile_rows, 128)
        p = pred_ref[0].astype(jnp.float32)

        def fold(x):
            # (tile_rows, 128) -> (8, 128): vreg-wise VPU adds only, no XLU.
            return x.reshape(tile_rows // 8, 8, 128).sum(axis=0)

        def accumulate(rr, pp):
            out_ref[0, 0, 0] += fold(rr)         # running sum(real)
            out_ref[0, 0, 1] += fold(pp)         # running sum(pred)
            out_ref[0, 0, 2] += fold(rr * pp)    # running sum(real * pred)

        if not needs_mask:
            accumulate(r, p)
        else:
            # Only the very last global row-tile overhangs the array; keep the
            # iota/compare/select mask off the hot path behind pl.when.
            if n_chunks == 1:
                g = t
            else:
                g = (p_idx % n_chunks) * tiles_per_chunk + t

            @pl.when(g != last_tile)
            def _():
                accumulate(r, p)

            @pl.when(g == last_tile)
            def _():
                row = g * tile_rows + lax.broadcasted_iota(
                    jnp.int32, (tile_rows, 128), 0)
                valid = row < total_rows
                accumulate(jnp.where(valid, r, 0.0), jnp.where(valid, p, 0.0))

    return kernel


def generalized_dice_loss(im_pred, im_real):
    """Reproduces GeneralizedDiceLoss.forward semantics."""
    # PyTorch: 4-D inputs are unsqueezed to 5-D.
    if im_pred.ndim == 4:
        im_pred = im_pred[None]
    if im_real.ndim == 4:
        im_real = im_real[None]
    assert im_pred.shape == im_real.shape, "pred/real shape mismatch"
    N, C = im_real.shape[:2]
    assert C >= _NUM_CLASSES, "need at least 3 class channels"
    n_elem = int(np.prod(im_real.shape[2:]))

    # Narrow dtypes stream fewer HBM bytes; the kernel upcasts after the load.
    sub = max(_sublane_multiple(im_real.dtype), _sublane_multiple(im_pred.dtype))
    min_elem = sub * 128

    needs_pad = (n_elem % 128 != 0) or (n_elem < min_elem)
    if needs_pad:
        # Lane-unaligned (or tiny) volume: slice out only the 3 class channels
        # that are ever read before the pad copy, so the copy touches 3
        # channels instead of C.
        # TODO(synk): a masked short last lane-tile inside the kernel would
        #             avoid this HBM copy entirely.
        pred2 = im_pred.reshape(N, C, n_elem)[:, :_NUM_CLASSES]
        real2 = im_real.reshape(N, C, n_elem)[:, :_NUM_CLASSES]
        pred2 = pred2.reshape(N * _NUM_CLASSES, n_elem)
        real2 = real2.reshape(N * _NUM_CLASSES, n_elem)
        padded = max(((n_elem + 127) // 128) * 128, min_elem)
        pad = padded - n_elem
        pred2 = jnp.pad(pred2, ((0, 0), (0, pad)))
        real2 = jnp.pad(real2, ((0, 0), (0, pad)))
        c_eff = _NUM_CLASSES
    else:
        # Free reshape (no transpose, no copy): (N, C, D, H, W) -> (N*C, DHW).
        # Channels >= 3 are never read (class selection happens in index_map).
        pred2 = im_pred.reshape(N * C, n_elem)
        real2 = im_real.reshape(N * C, n_elem)
        padded = n_elem
        c_eff = C

    rows = padded // 128
    pred3 = pred2.reshape(N * c_eff, rows, 128)
    real3 = real2.reshape(N * c_eff, rows, 128)

    # Row-tile: as large as possible (per-grid-step overhead ~0.35 us), rounded
    # to the packed-sublane requirement of the narrowest dtype.
    tile_rows = min(_MAX_TILE_ROWS, (rows // sub) * sub)
    total_tiles = -(-rows // tile_rows)
    needs_mask = (rows % tile_rows) != 0

    # v7x megacore balance: parallel extent is 3*N*n_chunks.  If N is odd and
    # the row-tiles split evenly, add a 2-way chunk axis so the extent is even.
    n_chunks = 2 if (N % 2 == 1 and total_tiles % 2 == 0) else 1
    tiles_per_chunk = total_tiles // n_chunks
    n_parallel = N * n_chunks

    kernel = _make_gdl_kernel(tile_rows, rows, n_chunks, tiles_per_chunk,
                              needs_mask)

    if n_chunks == 1:
        def in_index_map(c, p, t):
            return (p * c_eff + c, t, 0)
    else:
        def in_index_map(c, p, t):
            return ((p // n_chunks) * c_eff + c,
                    (p % n_chunks) * tiles_per_chunk + t, 0)

    in_spec = pl.BlockSpec((1, tile_rows, 128), in_index_map)
    out_spec = pl.BlockSpec((1, 1, 3, 8, 128), lambda c, p, t: (c, p, 0, 0, 0))

    in_bytes = (_NUM_CLASSES * N * rows * 128
                * (real3.dtype.itemsize + pred3.dtype.itemsize))
    out_bytes = _NUM_CLASSES * n_parallel * 3 * 8 * 128 * 4
    cost = pl.CostEstimate(
        flops=4 * _NUM_CLASSES * N * rows * 128,
        transcendentals=0,
        bytes_accessed=in_bytes + out_bytes,
    )

    # Double-buffered input blocks + headroom; needed on v5e (16 MiB scoped
    # default) for the larger tiles, comfortably under v7x's 64 MiB physical.
    blk_bytes = tile_rows * 128 * (real3.dtype.itemsize + pred3.dtype.itemsize)
    vmem_limit = int(min(max(2 * blk_bytes + (4 << 20), 16 << 20), 56 << 20))

    partials = pl.pallas_call(
        kernel,
        out_shape=jax.ShapeDtypeStruct(
            (_NUM_CLASSES, n_parallel, 3, 8, 128), jnp.float32),
        grid=(_NUM_CLASSES, n_parallel, tiles_per_chunk),
        in_specs=[in_spec, in_spec],
        out_specs=out_spec,
        compiler_params=pltpu.CompilerParams(
            dimension_semantics=("parallel", "parallel", "arbitrary"),
            vmem_limit_bytes=vmem_limit),
        cost_estimate=cost,
    )(real3, pred3)

    # ~20-flop finalize over 9 scalars (in the wrapper so the class/batch axes
    # remain fully parallel inside the kernel).
    sums = jnp.sum(partials, axis=(1, 3, 4))             # (3, 3)
    s_r, s_p, inter = sums[:, 0], sums[:, 1], sums[:, 2]
    w = jnp.where(s_r > 0, 1.0 / (s_r * s_r + _EPS), jnp.float32(1.0))
    num = jnp.sum(inter * w)
    den = jnp.sum((s_r + s_p) * w)
    return 1.0 - 2.0 * num / (den + _EPS)


def _reference(im_pred, im_real):
    """Pure-JAX reference mirroring the PyTorch forward."""
    if im_pred.ndim == 4:
        im_pred = im_pred[None]
    if im_real.ndim == 4:
        im_real = im_real[None]
    pred = jnp.transpose(im_pred, (1, 0, 2, 3, 4)).astype(jnp.float32)
    real = jnp.transpose(im_real, (1, 0, 2, 3, 4)).astype(jnp.float32)
    num = jnp.float32(0.0)
    den = jnp.float32(0.0)
    for c in range(3):
        s_r = jnp.sum(real[c])
        s_p = jnp.sum(pred[c])
        w = jnp.where(s_r > 0, 1.0 / (s_r ** 2 + _EPS), 1.0)
        num = num + jnp.sum(real[c] * pred[c]) * w
        den = den + (s_r + s_p) * w
    return 1.0 - 2.0 * num / (den + _EPS)


if __name__ == "__main__":
    key = jax.random.PRNGKey(0)

    def make_inputs(k, shape, pred_dtype):
        k1, k2 = jax.random.split(k)
        # Keep the segmentation mask narrow (int8) — the kernel upcasts after load.
        pred = jax.nn.sigmoid(
            jax.random.normal(k1, shape, dtype=jnp.float32)).astype(pred_dtype)
        real = (jax.random.uniform(k2, shape) > 0.5).astype(jnp.int8)
        return pred, real

    cases = [
        ((2, 3, 8, 16, 32), jnp.float32),   # lane-aligned, copy-free path
        ((1, 3, 5, 32, 32), jnp.float32),   # N odd -> 2 chunks; overhang-mask path
        ((2, 4, 3, 5, 7), jnp.bfloat16),    # C>3, unaligned -> slice + pad path
    ]

    loss = None
    for (shape, pdt), k in zip(cases, jax.random.split(key, len(cases))):
        im_pred, im_real = make_inputs(k, shape, pdt)
        loss = generalized_dice_loss(im_pred, im_real)
        jax.block_until_ready(loss)
        ref = _reference(im_pred, im_real)
        np.testing.assert_allclose(np.asarray(loss), np.asarray(ref),
                                   rtol=2e-5, atol=1e-6)

    print("KERNEL_OK")
</pallas_src>

<mosaic_0001>
module attributes {stable_mosaic.version = 11 : i64} {
  func.func @kernel(%arg0: i32, %arg1: i32, %arg2: i32, %arg3: memref<1x32x128xi8, #tpu.memory_space<vmem>>, %arg4: memref<1x32x128xf32, #tpu.memory_space<vmem>>, %arg5: memref<1x1x3x8x128xf32, #tpu.memory_space<vmem>>) attributes {dimension_semantics = [#tpu.dimension_semantics<parallel>, #tpu.dimension_semantics<parallel>, #tpu.dimension_semantics<arbitrary>], iteration_bounds = array<i64: 3, 2, 1>, scalar_prefetch = 0 : i64, scratch_operands = 0 : i64, tpu.core_type = #tpu.core_type<tc>, window_params = [{transform_indices = @transform_0, window_bounds = array<i64: 1, 32, 128>}, {transform_indices = @transform_1, window_bounds = array<i64: 1, 32, 128>}, {transform_indices = @transform_2, window_bounds = array<i64: 1, 1, 3, 8, 128>}]} {
    %c0_i32 = arith.constant 0 : i32
    %0 = arith.cmpi eq, %arg2, %c0_i32 : i32
    %1 = arith.extui %0 : i1 to i32
    %c0_i32_0 = arith.constant 0 : i32
    %2 = arith.cmpi ne, %1, %c0_i32_0 : i32
    scf.if %2 {
      %cst_36 = arith.constant 0.000000e+00 : f32
      %33 = vector.broadcast %cst_36 : f32 to vector<1x1x3x8x128xf32>
      %c0_37 = arith.constant 0 : index
      %c0_38 = arith.constant 0 : index
      %c0_39 = arith.constant 0 : index
      %c0_40 = arith.constant 0 : index
      %c0_41 = arith.constant 0 : index
      %34 = vector.load %arg5[%c0_37, %c0_38, %c0_39, %c0_40, %c0_41] : memref<1x1x3x8x128xf32, #tpu.memory_space<vmem>>, vector<1x1x3x8x128xf32>
      tpu.vector_store %arg5[%c0_37, %c0_38, %c0_39, %c0_40, %c0_41], %33 {strides = array<i32>} : memref<1x1x3x8x128xf32, #tpu.memory_space<vmem>>, vector<1x1x3x8x128xf32>,
    } else {
    }
    %c0 = arith.constant 0 : index
    %c0_1 = arith.constant 0 : index
    %c0_2 = arith.constant 0 : index
    %3 = vector.load %arg3[%c0, %c0_1, %c0_2] : memref<1x32x128xi8, #tpu.memory_space<vmem>>, vector<1x32x128xi8>
    %4 = vector.shape_cast %3 : vector<1x32x128xi8> to vector<32x128xi8>
    %5 = arith.sitofp %4 : vector<32x128xi8> to vector<32x128xf32>
    %c0_3 = arith.constant 0 : index
    %c0_4 = arith.constant 0 : index
    %c0_5 = arith.constant 0 : index
    %6 = vector.load %arg4[%c0_3, %c0_4, %c0_5] : memref<1x32x128xf32, #tpu.memory_space<vmem>>, vector<1x32x128xf32>
    %7 = vector.shape_cast %6 : vector<1x32x128xf32> to vector<32x128xf32>
    %c0_6 = arith.constant 0 : index
    %c0_7 = arith.constant 0 : index
    %c0_8 = arith.constant 0 : index
    %c0_9 = arith.constant 0 : index
    %c0_10 = arith.constant 0 : index
    %8 = vector.load %arg5[%c0_6, %c0_7, %c0_8, %c0_9, %c0_10] : memref<1x1x3x8x128xf32, #tpu.memory_space<vmem>>, vector<1x1x1x8x128xf32>
    %9 = vector.shape_cast %8 : vector<1x1x1x8x128xf32> to vector<8x128xf32>
    %10 = vector.shape_cast %5 : vector<32x128xf32> to vector<4x8x128xf32>
    %cst = arith.constant dense<0.000000e+00> : vector<8x128xf32>
    %11 = vector.multi_reduction <add>, %10, %cst [0] : vector<4x8x128xf32> to vector<8x128xf32>
    %12 = arith.addf %9, %11 : vector<8x128xf32>
    %c0_11 = arith.constant 0 : index
    %c0_12 = arith.constant 0 : index
    %c0_13 = arith.constant 0 : index
    %c0_14 = arith.constant 0 : index
    %c0_15 = arith.constant 0 : index
    %13 = vector.load %arg5[%c0_11, %c0_12, %c0_13, %c0_14, %c0_15] : memref<1x1x3x8x128xf32, #tpu.memory_space<vmem>>, vector<1x1x1x8x128xf32>
    %14 = vector.shape_cast %13 : vector<1x1x1x8x128xf32> to vector<8x128xf32>
    %15 = vector.shape_cast %12 : vector<8x128xf32> to vector<1x1x1x8x128xf32>
    tpu.vector_store %arg5[%c0_11, %c0_12, %c0_13, %c0_14, %c0_15], %15 {strides = array<i32>} : memref<1x1x3x8x128xf32, #tpu.memory_space<vmem>>, vector<1x1x1x8x128xf32>,
    %c0_16 = arith.constant 0 : index
    %c0_17 = arith.constant 0 : index
    %c1 = arith.constant 1 : index
    %c0_18 = arith.constant 0 : index
    %c0_19 = arith.constant 0 : index
    %16 = vector.load %arg5[%c0_16, %c0_17, %c1, %c0_18, %c0_19] : memref<1x1x3x8x128xf32, #tpu.memory_space<vmem>>, vector<1x1x1x8x128xf32>
    %17 = vector.shape_cast %16 : vector<1x1x1x8x128xf32> to vector<8x128xf32>
    %18 = vector.shape_cast %7 : vector<32x128xf32> to vector<4x8x128xf32>
    %cst_20 = arith.constant dense<0.000000e+00> : vector<8x128xf32>
    %19 = vector.multi_reduction <add>, %18, %cst_20 [0] : vector<4x8x128xf32> to vector<8x128xf32>
    %20 = arith.addf %17, %19 : vector<8x128xf32>
    %c0_21 = arith.constant 0 : index
    %c0_22 = arith.constant 0 : index
    %c1_23 = arith.constant 1 : index
    %c0_24 = arith.constant 0 : index
    %c0_25 = arith.constant 0 : index
    %21 = vector.load %arg5[%c0_21, %c0_22, %c1_23, %c0_24, %c0_25] : memref<1x1x3x8x128xf32, #tpu.memory_space<vmem>>, vector<1x1x1x8x128xf32>
    %22 = vector.shape_cast %21 : vector<1x1x1x8x128xf32> to vector<8x128xf32>
    %23 = vector.shape_cast %20 : vector<8x128xf32> to vector<1x1x1x8x128xf32>
    tpu.vector_store %arg5[%c0_21, %c0_22, %c1_23, %c0_24, %c0_25], %23 {strides = array<i32>} : memref<1x1x3x8x128xf32, #tpu.memory_space<vmem>>, vector<1x1x1x8x128xf32>,
    %c0_26 = arith.constant 0 : index
    %c0_27 = arith.constant 0 : index
    %c2 = arith.constant 2 : index
    %c0_28 = arith.constant 0 : index
    %c0_29 = arith.constant 0 : index
    %24 = vector.load %arg5[%c0_26, %c0_27, %c2, %c0_28, %c0_29] : memref<1x1x3x8x128xf32, #tpu.memory_space<vmem>>, vector<1x1x1x8x128xf32>
    %25 = vector.shape_cast %24 : vector<1x1x1x8x128xf32> to vector<8x128xf32>
    %26 = arith.mulf %5, %7 : vector<32x128xf32>
    %27 = vector.shape_cast %26 : vector<32x128xf32> to vector<4x8x128xf32>
    %cst_30 = arith.constant dense<0.000000e+00> : vector<8x128xf32>
    %28 = vector.multi_reduction <add>, %27, %cst_30 [0] : vector<4x8x128xf32> to vector<8x128xf32>
    %29 = arith.addf %25, %28 : vector<8x128xf32>
    %c0_31 = arith.constant 0 : index
    %c0_32 = arith.constant 0 : index
    %c2_33 = arith.constant 2 : index
    %c0_34 = arith.constant 0 : index
    %c0_35 = arith.constant 0 : index
    %30 = vector.load %arg5[%c0_31, %c0_32, %c2_33, %c0_34, %c0_35] : memref<1x1x3x8x128xf32, #tpu.memory_space<vmem>>, vector<1x1x1x8x128xf32>
    %31 = vector.shape_cast %30 : vector<1x1x1x8x128xf32> to vector<8x128xf32>
    %32 = vector.shape_cast %29 : vector<8x128xf32> to vector<1x1x1x8x128xf32>
    tpu.vector_store %arg5[%c0_31, %c0_32, %c2_33, %c0_34, %c0_35], %32 {strides = array<i32>} : memref<1x1x3x8x128xf32, #tpu.memory_space<vmem>>, vector<1x1x1x8x128xf32>,
    return
  }
  func.func @transform_0(%arg0: i32, %arg1: i32, %arg2: i32) -> (i32, i32, i32) {
    %c3_i32 = arith.constant 3 : i32
    %0 = arith.muli %arg1, %c3_i32 : i32
    %1 = arith.addi %0, %arg0 : i32
    %c0_i32 = arith.constant 0 : i32
    %c0_i32_0 = arith.constant 0 : i32
    return %1, %arg2, %c0_i32 : i32, i32, i32
  }
  func.func @transform_1(%arg0: i32, %arg1: i32, %arg2: i32) -> (i32, i32, i32) {
    %c3_i32 = arith.constant 3 : i32
    %0 = arith.muli %arg1, %c3_i32 : i32
    %1 = arith.addi %0, %arg0 : i32
    %c0_i32 = arith.constant 0 : i32
    %c0_i32_0 = arith.constant 0 : i32
    return %1, %arg2, %c0_i32 : i32, i32, i32
  }
  func.func @transform_2(%arg0: i32, %arg1: i32, %arg2: i32) -> (i32, i32, i32, i32, i32) {
    %c0_i32 = arith.constant 0 : i32
    %c0_i32_0 = arith.constant 0 : i32
    %c0_i32_1 = arith.constant 0 : i32
    %c0_i32_2 = arith.constant 0 : i32
    return %arg0, %arg1, %c0_i32, %c0_i32_0, %c0_i32_1 : i32, i32, i32, i32, i32
  }
}

</mosaic_0001>

<bundles_post_ra>
// kernel: tpu_custom_call.1
= control target key start
LH: loop header
LB: loop body
LE: loop exit
PB: predicated region body
PF: predicated region fallthrough
CT: control target
= control target key end

     0   :  { %s1057_s0 = inlined_call_operand.hbm [shape: s8[6,32,128], index: 0, kind: input, shape index: {}]   ;;  %s1058_s1 = inlined_call_operand.hbm [shape: f32[6,32,128], index: 1, kind: input, shape index: {}]   ;;  %s1059_s2 = inlined_call_operand.hbm [shape: f32[3,2,3,8,128], index: 2, kind: output, shape index: {}]  }
   0x1   :  { %1064 = sst [smem:[#allocation13_spill]] %s1057_s0 }
   0x2   :  { %7 = vsyncpa [#allocation3], 0 }
   0x3   :  { %9 = vsyncpa [#allocation3 + $0x1], 0 }
   0x4   :  { %10 = vsyncpa [#allocation6], 0 }
   0x5   :  { %12 = vsyncpa [#allocation6 + $0x1], 0 }
   0x6   :  { %13 = vsyncpa [#allocation4], 0 }
   0x7   :  { %15 = vsyncpa [#allocation4 + $0x1], 0  ;;  %s770_s9 = smov 0   ;;  %s772_s10 = smov 0  }
   0x8   :  { %s774_s11 = smov 0   ;;  %s776_s12 = smov 0  }
   0x9   :  { %s778_s13 = smov 0   ;;  %s780_s14 = smov 0  }
   0xa   :  { %s782_s15 = smov 0   ;;  %s784_s16 = smov 0  }
   0xb   :  { %s786_s17 = smov 0   ;;  %s788_s18 = smov 0  }
   0xc   :  { %s790_s19 = smov 0  }
   0xd LB: > { %s425_s20 = sadd.s32 4294967295, %s746_s19   ;;  %s426_s21 = sadd.s32 4294967294, %s746_s19   ;;  %s746_s19 = sphi %s790_s19, %s21_s19   ;;  %s742_s18 = sphi %s788_s18, %s1090_s18   ;;  %s738_s17 = sphi %s786_s17, %s1089_s17   ;;  %s734_s16 = sphi %s784_s16, %s1088_s16   ;;  %s730_s15 = sphi %s782_s15, %s1087_s15   ;;  %s726_s14 = sphi %s780_s14, %s1086_s14   ;;  %s722_s13 = sphi %s778_s13, %s1085_s13   ;;  %s718_s12 = sphi %s776_s12, %s1084_s12   ;;  %s714_s11 = sphi %s774_s11, %s1083_s11   ;;  %s710_s10 = sphi %s772_s10, %s1082_s10   ;;  %s706_s9 = sphi %s770_s9, %s1081_s9  }
   0xe   : > { %s36_s22 = sadd.s32 1, %s738_s17  ;;  %s40_s23 = sadd.s32 1, %s742_s18 }
   0xf   : > { %p38_p0 = scmp.ge.s32.totalorder %s36_s22, 2  ;;  %s44_s24 = smul.u32 3, %s738_s17 }
  0x10   : > { %s53_s25 = sadd.s32 1, %s726_s14  ;;  %p60_p1 = scmp.ne.s32.totalorder %s726_s14, %s722_s13 }
  0x11   : > { %s1092_s22 = smov (%p38_p0, %s36_s22), 0  ;;  %s1094_s23 = smov (!%p38_p0, %s40_s23), %s742_s18 }
  0x12   : > { %1065 = sst [smem:[#allocation11_spill]] %s1092_s22  ;;  %s835_s26 = sadd.s32 %s742_s18, %s44_s24 }
  0x13   : > { %s46_s27 = smul.u32 3, %s1092_s22  ;;  %p42_p2 = scmp.ge.s32.totalorder %s1094_s23, 3 }
  0x14   : > { %p61_p3 = scmp.eq.s32.totalorder %s746_s19, 0  ;;  %p66_p4 = scmp.ne.s32.totalorder %s722_s13, %s718_s12 }
  0x15   : > { %p67_p5 = scmp.eq.s32.totalorder %s425_s20, 0  ;;  %s1096_s23 = smov (%p42_p2, %s1094_s23), 0 }
  0x16   : > { %1066 = sst [smem:[#allocation12_spill]] %s1096_s23  ;;  %p844_p6 = por %p61_p3, %p60_p1 }
  0x17   : > { %p848_p7 = por %p67_p5, %p66_p4  ;;  %s47_s30 = sadd.s32 %s46_s27, %s1096_s23 }
  0x18   : > { %s108_s3 = ssub.s32 %s742_s18, %s1096_s23  ;;  %s48_s4 = ssub.s32 %s835_s26, %s47_s30 }
  0x19   : > { %s1068_s29 = scalar_select %p848_p7, 1, 0 }
  0x1a   : > { %s109_s5 = ssub.s32 %s738_s17, %s1092_s22  ;;  %p51_p8 = scmp.eq.s32.totalorder %s48_s4, 0 }
  0x1b   : > { %s110_s6 = sor.u32 %s109_s5, %s108_s3  ;;  %s113_s7 = sadd.s32 1, %s714_s11 }
  0x1c   : > { %p111_p9 = scmp.eq.s32.totalorder %s110_s6, 0  ;;  %p123_p10 = scmp.ne.s32.totalorder %s714_s11, %s710_s10 }
  0x1d   : > { %s860_s8 = scalar_select %p51_p8, %s726_s14, %s53_s25  }
  0x1e   : > { %s863_s12 = scalar_select %p111_p9, %s714_s11, %s113_s7  }
  0x1f   : > { %p124_p11 = scmp.eq.s32.totalorder %s425_s20, 5  ;;  %p129_p12 = scmp.ne.s32.totalorder %s710_s10, %s706_s9 }
  0x20   : > { %p130_p13 = scmp.eq.s32.totalorder %s426_s21, 5  ;;  %p465_p2 = scmp.lt.s32.totalorder %s746_s19, 6 }
  0x21   : > { %p873_p0 = por %p124_p11, %p123_p10  ;;  %s883_s25 = sand.u32 1, %s726_s14  }
  0x22   : > { %p877_p1 = por %p130_p13, %p129_p12  ;;  %s430_s30 = sshll.u32 %s835_s26, 7 }
  0x23   : > { %s1069_s24 = scalar_select %p873_p0, 1, 0 }
  0x24   : > { %s1070_s27 = scalar_select %p877_p1, 1, 0 }
  0x25   : > { %s429_s3 = sshll.u32 %s883_s25, 3  ;;  %s1071_s0 = sld [smem:[#allocation13_spill]] }
  0x26   : > { %s154_s21 = scalar_lea.vmem [#allocation2], %s429_s3  ;;  %p894_p3 = pnand %p465_p2, %p844_p6 }
  0x27   : > { %s164_s6 = sshll.u32 %s154_s21, 4  ;;  %s151_s4 = scalar_lea.sflag [#allocation3], %s883_s25  ;;  %s898_s6 = int_to_ptr.vmem [resolvable:$true] %s164_s6 }
  0x28   : > { %p562_p8 = pneg %p894_p3 }
  0x2b   : > { %s890_s5 = scalar_lea.hbm %s1071_s0, %s430_s30  ;;  %s565_s20 = scalar_lea.hbm %s1071_s0, 768 }
  0x2c   : > { %s560_s30 = scalar_lea.hbm %s890_s5, 128  ;;  %p566_p6 = scmp.lt.u32.totalorder %s890_s5, %s1071_s0 }
  0x2d   : > { %p561_p5 = scmp.ne.s32.totalorder %s890_s5, %s560_s30  ;;  %p567_p11 = scmp.lt.u32.totalorder %s565_s20, %s560_s30 }
  0x2e   : > { %p569_p13 = scmp.lt.u32.totalorder %s560_s30, %s890_s5 }
  0x2f   : > { %p563_p9 = pnand %p562_p8, %p561_p5  ;;  %p568_p12 = por %p567_p11, %p566_p6 }
  0x31   : > { %p564_p10 = pneg %p563_p9  ;;  %p570_p2 = por %p569_p13, %p568_p12 }
  0x33   : > { %p571_p4 = pnand %p570_p2, %p564_p10 }
  0x35   : > { %574 = shalt.err (!%p571_p4)
}
  0x36   : > { %s575_s23 = scalar_lea.vmem %s898_s6, 128  ;;  %s748_s28 = smov [#allocation2]  }
  0x37   : > { %p576_p5 = scmp.ne.s32.totalorder %s898_s6, %s575_s23  ;;  %s580_s3 = sshll.u32 %s748_s28, 4  ;;  %s581_s3 = int_to_ptr.vmem [resolvable:$false] %s580_s3 }
  0x38   : > { %s582_s22 = scalar_lea.vmem %s581_s3, 256  ;;  %p583_p0 = scmp.lt.s32.totalorder %s898_s6, %s581_s3 }
  0x39   : > { %p578_p9 = pnand %p576_p5, %p562_p8  ;;  %p584_p6 = scmp.lt.s32.totalorder %s582_s22, %s575_s23 }
  0x3b   : > { %p579_p1 = pneg %p578_p9  ;;  %p585_p11 = por %p584_p6, %p583_p0 }
  0x3d   : > { %p586_p12 = pnand %p585_p11, %p579_p1 }
  0x3f   : > { %589 = shalt.err (!%p586_p12)
}
  0x40   : > { %457 = dma.hbm_to_vmem [thread:$0]  (!%p894_p3), %s890_s5, 128, %s898_s6, %s151_s4  }
  0x41   : > { %p194_p4 = scmp.lt.s32.totalorder %s746_s19, 7  ;;  %s431_s30 = sshll.u32 %s883_s25, 5 }
  0x42   : > { %s1073_s20 = sshll.u32 %s835_s26, 9  ;;  %p1074_p0 = scmp.ge.s32.totalorder %s746_s19, 1 }
  0x43   : > { %s935_s23 = scalar_lea.hbm %s1058_s1, %s1073_s20  ;;  %s175_s22 = scalar_lea.vmem [#allocation5], %s431_s30 }
  0x44   : > { %p939_p1 = pnand %p1074_p0, %p194_p4  ;;  %s186_s0 = sshll.u32 %s175_s22, 4  ;;  %s943_s0 = int_to_ptr.vmem [resolvable:$true] %s186_s0 }
  0x45   : > { %s172_s5 = scalar_lea.sflag [#allocation6], %s883_s25  ;;  %s590_s26 = scalar_lea.hbm %s935_s23, 512 }
  0x46   : > { %p591_p10 = scmp.ne.s32.totalorder %s935_s23, %s590_s26  ;;  %s595_s20 = scalar_lea.hbm %s1058_s1, 3072 }
  0x47   : > { %p596_p5 = scmp.lt.u32.totalorder %s935_s23, %s1058_s1  ;;  %p597_p9 = scmp.lt.u32.totalorder %s595_s20, %s590_s26 }
  0x48   : > { %p593_p13 = pnand %p591_p10, %p562_p8  ;;  %p599_p11 = scmp.lt.u32.totalorder %s590_s26, %s935_s23 }
  0x49   : > { %p598_p6 = por %p597_p9, %p596_p5 }
  0x4a   : > { %p594_p2 = pneg %p593_p13 }
  0x4b   : > { %p600_p12 = por %p599_p11, %p598_p6 }
  0x4d   : > { %p601_p4 = pnand %p600_p12, %p594_p2 }
  0x4f   : > { %604 = shalt.err (!%p601_p4)
}
  0x50   : > { %s605_s30 = scalar_lea.vmem %s943_s0, 512  ;;  %s749_s22 = smov [#allocation5]  }
  0x51   : > { %p606_p0 = scmp.ne.s32.totalorder %s943_s0, %s605_s30  ;;  %s610_s6 = sshll.u32 %s749_s22, 4  ;;  %s611_s6 = int_to_ptr.vmem [resolvable:$false] %s610_s6 }
  0x52   : > { %s612_s4 = scalar_lea.vmem %s611_s6, 1024  ;;  %p613_p7 = scmp.lt.s32.totalorder %s943_s0, %s611_s6 }
  0x53   : > { %p608_p10 = pnand %p606_p0, %p562_p8  ;;  %p614_p5 = scmp.lt.s32.totalorder %s612_s4, %s605_s30 }
  0x55   : > { %p609_p13 = pneg %p608_p10  ;;  %p615_p9 = por %p614_p5, %p613_p7 }
  0x57   : > { %p616_p6 = pnand %p615_p9, %p609_p13 }
  0x59   : > { %619 = shalt.err (!%p616_p6)
}
  0x5a   : > { %s750_s26 = smov 128   ;;  %s751_s20 = smov 8  }
  0x5b   : > { %460 = dma.hbm_to_vmem [thread:$0]  (!%p894_p3), %s935_s23, 512, %s943_s0, %s172_s5, %s750_s26, %s750_s26, %s751_s20  }
  0x5c   : > { %198 = sbr.rel (%p939_p1) target bundleno = 132 (0x84), region = 28  ;;  %s200_s21 = sand.u32 (!%p939_p1), 1, %s722_s13  }
  0x5d   : > { %s435_s28 = sshll.u32 (!%p939_p1), %s200_s21, 3  ;;  %s201_s30 = scalar_lea.sflag (!%p939_p1), [#allocation3], %s200_s21 }
  0x5e   : > { %s204_s22 = scalar_lea.vmem (!%p939_p1), [#allocation2], %s435_s28  ;;  %p1076_p7 = scmp.ne.s32.totalorder (!%p939_p1), %s1068_s29, 0 }
  0x63   : > { %693 = dma.done.wait (%p1076_p7), %s201_s30, 128  }
  0x64   : > { %695 = vsyncadd (%p1076_p7), %s201_s30, 4294967168  ;;  %s436_s6 = sshll.u32 %s200_s21, 5  ;;  %s210_s4 = scalar_lea.sflag [#allocation6], %s200_s21 }
  0x65   : > { %s213_s7 = scalar_lea.vmem [#allocation5], %s436_s6 }
  0x66   : > { %697 = dma.done.wait (%p1076_p7), %s210_s4, 512  }
  0x67   : > { %699 = vsyncadd (%p1076_p7), %s210_s4, 4294966784  ;;  %s236_s0 = sand.u32 1, %s710_s10   ;;  %v251_v0 = vld [vmem:[%s204_s22] sm:$0xff]  ;;  %v260_v5 = vld [vmem:[%s213_s7] sm:$0xff]  ;;  %s446_s25 = smul.u32 3, %s730_s15 }
  0x68   : > { %v252_v1 = vunpack.c.0.s8 %v251_v0  ;;  %v253_v2 = vunpack.c.1.s8 %v251_v0  ;;  %v254_v3 = vunpack.c.2.s8 %v251_v0  ;;  %v255_v4 = vunpack.c.3.s8 %v251_v0  ;;  %v261_v6 = vld [vmem:[%s213_s7 + $0x8] sm:$0xff]  ;;  %s445_s23 = smul.u32 24, %s236_s0  ;;  %v262_v7 = vld [vmem:[%s213_s7 + $0x10] sm:$0xff]  ;;  %v263_v13 = vld [vmem:[%s213_s7 + $0x18] sm:$0xff]  ;;  %s996_s28 = scalar_lea.sflag [#allocation4], %s236_s0 }
  0x69   : > { %v272_v8 = vadd.f32 %v261_v6, %v260_v5  ;;  %s447_s29 = smul.u32 6, %s734_s16  ;;  %p1077_p8 = scmp.ne.s32.totalorder %s1069_s24, 0 }
  0x6a   : > { %v256_v9 = vcvt.s32.f32 %v252_v1  ;;  %v257_v10 = vcvt.s32.f32 %v253_v2  ;;  %v258_v11 = vcvt.s32.f32 %v254_v3  ;;  %v259_v12 = vcvt.s32.f32 %v255_v4  ;;  %s238_s3 = scalar_lea.vmem [#allocation7], %s445_s23  ;;  %s752_s22 = smov [#allocation7]  }
  0x6b   : > { %v273_v14 = vadd.f32 %v272_v8, %v262_v7  ;;  %s301_s15 = sadd.s32 %s447_s29, %s446_s25  ;;  %s304_s26 = sshll.u32 %s238_s3, 4  ;;  %s992_s26 = int_to_ptr.vmem [resolvable:$true] %s304_s26 }
  0x6c   : > { %v265_v15 = vadd.f32 %v257_v10, %v256_v9  ;;  %v279_v16 = vmul.f32 %v260_v5, %v256_v9  ;;  %v280_v17 = vmul.f32 %v261_v6, %v257_v10  ;;  %v281_v18 = vmul.f32 %v262_v7, %v258_v11  ;;  %s441_s5 = sshll.u32 %s301_s15, 7  ;;  %s620_s30 = scalar_lea.vmem %s992_s26, 384 }
  0x6d   : > { %v274_v19 = vadd.f32 %v273_v14, %v263_v13  ;;  %v282_v21 = vmul.f32 %v263_v13, %v259_v12  ;;  %s990_s21 = scalar_lea.hbm %s1059_s2, %s441_s5  ;;  %p621_p3 = scmp.ne.s32.totalorder %s992_s26, %s620_s30 }
  0x6e   : > { %v266_v20 = vadd.f32 %v265_v15, %v258_v11  ;;  %v283_v22 = vadd.f32 %v280_v17, %v279_v16  ;;  %s624_s6 = sshll.u32 %s752_s22, 4  ;;  %s625_s6 = int_to_ptr.vmem [resolvable:$false] %s624_s6 }
  0x6f   : > { %438 = vst [vmem:[%s238_s3 + $0x8] sm:$0xff] %v274_v19  ;;  %p622_p1 = pnand %p621_p3, %p1077_p8  ;;  %s626_s4 = scalar_lea.vmem %s625_s6, 768 }
  0x70   : > { %v267_v23 = vadd.f32 %v266_v20, %v259_v12  ;;  %v284_v24 = vadd.f32 %v283_v22, %v281_v18  ;;  %p627_p11 = scmp.lt.s32.totalorder %s992_s26, %s625_s6  ;;  %p628_p12 = scmp.lt.s32.totalorder %s626_s4, %s620_s30 }
  0x71   : > { %p623_p2 = pneg %p622_p1 }
  0x72   : > { %v285_v25 = vadd.f32 %v284_v24, %v282_v21  ;;  %269 = vst [vmem:[%s238_s3] sm:$0xff] %v267_v23  ;;  %p629_p4 = por %p628_p12, %p627_p11 }
  0x74   : > { %440 = vst [vmem:[%s238_s3 + $0x10] sm:$0xff] %v285_v25  ;;  %p630_p0 = pnand %p629_p4, %p623_p2 }
  0x76   : > { %633 = shalt.err (!%p630_p0)
}
  0x77   : > { %s634_s7 = scalar_lea.hbm %s990_s21, 384  ;;  %s638_s23 = scalar_lea.hbm %s1059_s2, 2304 }
  0x78   : > { %p635_p10 = scmp.ne.s32.totalorder %s990_s21, %s634_s7  ;;  %p639_p9 = scmp.lt.u32.totalorder %s990_s21, %s1059_s2 }
  0x79   : > { %p640_p6 = scmp.lt.u32.totalorder %s638_s23, %s634_s7  ;;  %p642_p3 = scmp.lt.u32.totalorder %s634_s7, %s990_s21 }
  0x7a   : > { %p636_p13 = pnand %p635_p10, %p1077_p8 }
  0x7b   : > { %p641_p7 = por %p640_p6, %p639_p9 }
  0x7c   : > { %p637_p5 = pneg %p636_p13 }
  0x7d   : > { %p643_p1 = por %p642_p3, %p641_p7 }
  0x7f   : > { %p644_p2 = pnand %p643_p1, %p637_p5 }
  0x81   : > { %647 = shalt.err (!%p644_p2)
}
  0x82   : > { %s753_s3 = smov 128   ;;  %s754_s5 = smov 8  }
  0x83   : > { %452 = dma.vmem_to_hbm [thread:$0]  (%p1077_p8), %s992_s26, 384, %s990_s21, %s996_s28, %s753_s3, %s753_s3, %s754_s5  }
  0x84 PF: > { %p466_p11 = scmp.ge.s32.totalorder %s746_s19, 2  ;;  %s319_s16 = sand.u32 1, %s706_s9  }
  0x85   : > { %p1078_p12 = scmp.ne.s32.totalorder %s1070_s27, 0  ;;  %s320_s20 = scalar_lea.sflag [#allocation4], %s319_s16 }
  0x87   : > { %p462_p4 = pnand %p466_p11, %p1078_p12 }
  0x89   : > { %701 = dma.done.wait (!%p462_p4), %s320_s20, 384  }
  0x8a   : > { %703 = vsyncadd (!%p462_p4), %s320_s20, 4294966912  ;;  %s21_s19 = sadd.s32 1, %s746_s19   ;;  %s1079_s24 = sld [smem:[#allocation11_spill]] }
  0x8b   : > { %p18_p0 = scmp.ge.s32.totalorder %s21_s19, 8   ;;  %s1080_s26 = sld [smem:[#allocation12_spill]] }
  0x8c   : > { %s1081_s9 = smov %s710_s10  ;;  %s1082_s10 = smov %s714_s11 }
  0x8d   : > { %s1083_s11 = smov %s863_s12  ;;  %s1084_s12 = smov %s722_s13 }
  0x8e   : > { %s1085_s13 = smov %s726_s14  ;;  %s1086_s14 = smov %s860_s8 }
  0x8f   : > { %s1087_s15 = smov %s738_s17  ;;  %s1088_s16 = smov %s742_s18 }
  0x90   : > { %s1089_s17 = smov %s1079_s24  ;;  %20 = sbr.rel (!%p18_p0) target bundleno = 13 (0xd), region = 92 }
  0x91   : > { %s1090_s18 = smov %s1080_s26 }
  0x97   :  { %325 = vsyncpa [#allocation3], 1 }
  0x98   :  { %327 = vsyncpa [#allocation3 + $0x1], 1 }
  0x99   :  { %328 = vsyncpa [#allocation6], 1 }
  0x9a   :  { %330 = vsyncpa [#allocation6 + $0x1], 1 }
  0x9b   :  { %331 = vsyncpa [#allocation4], 1 }
  0x9c   :  { %333 = vsyncpa [#allocation4 + $0x1], 1 }

</bundles_post_ra>
